<compile_context>
chip_gen: v7x
topology: tpu7x:2x2x1
jax: 0.10.0
libtpu: 0.0.40
codegen_flags: <defaults>
</compile_context>

<pallas_src>
import math

import jax
import jax.numpy as jnp
import numpy as np
from jax.experimental import pallas as pl
from jax.experimental.pallas import tpu as pltpu

_SUBLANE = 8
_LANE_CHUNK = 256     # lanes processed per inner step; bounds vreg pressure


def _round_up(x: int, mult: int) -> int:
    return ((x + mult - 1) // mult) * mult


def _tril_layout(n: int, tril: bool, sqrt: bool):
    """Static (row, col, scale) triples in LogEig.embed output order."""
    rows, cols, scales = [], [], []
    if tril:
        for k in range(n):                        # diagonal entries first
            rows.append(k); cols.append(k); scales.append(1.0)
        off = math.sqrt(2.0) if sqrt else 1.0     # strict lower, row-major
        for i in range(1, n):                     # (matches torch.tril_indices)
            for j in range(i):
                rows.append(i); cols.append(j); scales.append(off)
    else:                                         # plain row-major flatten
        for i in range(n):
            for j in range(n):
                rows.append(i); cols.append(j); scales.append(1.0)
    return rows, cols, scales


def _choose_batch_tile(b_pad: int, max_tile: int) -> int:
    """Largest multiple-of-128 divisor of b_pad that is <= max_tile.

    Prefers >= 2 grid steps (so v7x's two TensorCores both get work via the
    "parallel" grid axis) as long as each step still keeps >= 512 lanes to
    amortize the per-grid-step pipeline overhead.
    """
    max_tile = max(128, _round_up(max_tile, 128))
    cap = min(max_tile, b_pad)
    divs = [t for t in range(128, cap + 1, 128) if b_pad % t == 0]
    tb = max(divs)
    multi = [t for t in divs if b_pad // t >= 2 and t >= 512]
    if multi:
        tb = max(multi)
    return tb


def _make_logeig_kernel(n, rows, cols, scales, m_pad):
    m = len(rows)

    def kernel(u_ref, logs_ref, o_ref):
        # u_ref:    (n, n, TB)    u_ref[i, k, b] = U[b, i, k]
        # logs_ref: (n, TB)       logs_ref[k, b] = log s[b, k]
        # o_ref:    (m_pad, TB)   o_ref[p, b] = scale_p * logm(X)[b, row_p, col_p]
        tb = o_ref.shape[-1]
        lc = min(_LANE_CHUNK, tb)
        for c0 in range(0, tb, lc):                       # static lane chunks
            cw = min(lc, tb - c0)                         # multiple of 128
            logs_c = logs_ref[:, pl.ds(c0, cw)]           # (n, cw)
            for r0 in range(0, m_pad, _SUBLANE):          # 8-row output chunks
                rows_out = []
                a_cache = {}
                for p in range(r0, r0 + _SUBLANE):
                    if p < m:
                        i, j = rows[p], cols[p]
                        if i not in a_cache:              # a_i = U[:,i,:] * log s
                            a_cache[i] = u_ref[i, :, pl.ds(c0, cw)] * logs_c
                        u_j = u_ref[j, :, pl.ds(c0, cw)]
                        # out[p, b] = sum_k U[b,i,k] log s[b,k] U[b,j,k]
                        rows_out.append(
                            jnp.sum(a_cache[i] * u_j, axis=0, keepdims=True))
                    else:                                 # padded output rows
                        rows_out.append(jnp.zeros((1, cw), jnp.float32))
                chunk = jnp.concatenate(rows_out, axis=0)  # (8, cw), packed
                sc = [scales[p] for p in range(r0, min(r0 + _SUBLANE, m))]
                if sc and any(c != 1.0 for c in sc):
                    if all(c == sc[0] for c in sc):
                        chunk = chunk * sc[0]             # uniform scalar scale
                    else:
                        full = sc + [1.0] * (_SUBLANE - len(sc))
                        chunk = chunk * jnp.asarray(full, jnp.float32)[:, None]
                # one dense, unmasked (8, cw) store per chunk
                o_ref[pl.ds(r0, _SUBLANE), pl.ds(c0, cw)] = chunk

    return kernel


def log_eig(x: jnp.ndarray, *, tril: bool = True, sqrt: bool = True,
            batch_tile: int = 4096) -> jnp.ndarray:
    """Pallas implementation of LogEig.forward for x of shape (B, n, n)."""
    B, n, n2 = x.shape
    assert n == n2

    # TODO(synk): the symmetric eigendecomposition (functional.sym_logm's eigh)
    # has no Pallas/Mosaic primitive; it is computed in plain JAX.
    s, u = jnp.linalg.eigh(x)                      # s: (B, n), u: (B, n, n)
    u = u.astype(jnp.float32)
    logs = jnp.log(s.astype(jnp.float32))          # hoisted out of the kernel
    # NOTE: streaming u as bfloat16 would cut kernel HBM traffic ~40% (biggest
    # relative win on v5e); kept in f32 to stay inside the accuracy budget.

    # Batch on the lane (last) axis.
    u_t = jnp.transpose(u, (1, 2, 0))              # (n, n, B)
    logs_t = jnp.transpose(logs, (1, 0))           # (n, B)

    b_pad = _round_up(B, 128)                      # padding always < 128 lanes
    if b_pad != B:
        pad = b_pad - B
        u_t = jnp.pad(u_t, ((0, 0), (0, 0), (0, pad)))
        logs_t = jnp.pad(logs_t, ((0, 0), (0, pad)))   # zeros == log(1)

    tb = _choose_batch_tile(b_pad, batch_tile)

    rows, cols, scales = _tril_layout(n, tril, sqrt)
    m = len(rows)                                  # n*(n+1)//2 (or n*n)
    m_pad = _round_up(m, _SUBLANE)

    out_t = pl.pallas_call(
        _make_logeig_kernel(n, rows, cols, scales, m_pad),
        out_shape=jax.ShapeDtypeStruct((m_pad, b_pad), jnp.float32),
        grid_spec=pltpu.PrefetchScalarGridSpec(
            num_scalar_prefetch=0,
            grid=(b_pad // tb,),
            in_specs=[
                pl.BlockSpec((n, n, tb), lambda b: (0, 0, b)),   # eigenvectors
                pl.BlockSpec((n, tb), lambda b: (0, b)),         # log eigvals
            ],
            out_specs=pl.BlockSpec((m_pad, tb), lambda b: (0, b)),
        ),
        compiler_params=pltpu.CompilerParams(
            dimension_semantics=("parallel",)),
    )(u_t, logs_t)

    # TODO(synk): if downstream can consume feature-major (m, B) output, return
    # out_t[:m, :B] directly and drop this transpose (a pure HBM copy).
    return out_t[:m, :B].T                         # (B, m)


def _reference(x: jnp.ndarray, *, tril: bool = True, sqrt: bool = True):
    """Pure-JAX reference mirroring the PyTorch module."""
    B, n, _ = x.shape
    s, u = jnp.linalg.eigh(x)
    L = jnp.einsum("bik,bk,bjk->bij", u, jnp.log(s), u,
                   precision=jax.lax.Precision.HIGHEST)
    if not tril:
        return L.reshape(B, n * n)
    rows, cols, scales = _tril_layout(n, True, sqrt)
    vec = L[:, np.array(rows), np.array(cols)]
    return vec * jnp.asarray(scales, dtype=L.dtype)[None, :]


if __name__ == "__main__":
    B, n = 272, 8          # non-multiple of 128 -> exercises batch padding
    key = jax.random.PRNGKey(0)
    a = jax.random.normal(key, (B, n, n), dtype=jnp.float32)
    # SPD input: A A^T + 0.5 I
    x = jnp.einsum("bik,bjk->bij", a, a) + 0.5 * jnp.eye(n, dtype=jnp.float32)

    ref = _reference(x)

    # multi-step grid + padding path
    out = jax.block_until_ready(log_eig(x, batch_tile=128))
    assert out.shape == (B, n * (n + 1) // 2)
    np.testing.assert_allclose(np.asarray(out), np.asarray(ref),
                               rtol=1e-4, atol=1e-4)

    # default (large tile, single/few steps) path
    out2 = jax.block_until_ready(log_eig(x))
    np.testing.assert_allclose(np.asarray(out2), np.asarray(ref),
                               rtol=1e-4, atol=1e-4)

    print("KERNEL_OK")
</pallas_src>

<mosaic_0001>
module attributes {stable_mosaic.version = 11 : i64} {
  func.func @kernel(%arg0: i32, %arg1: memref<8x8x128xf32, #tpu.memory_space<vmem>>, %arg2: memref<8x128xf32, #tpu.memory_space<vmem>>, %arg3: memref<40x128xf32, #tpu.memory_space<vmem>>) attributes {dimension_semantics = [#tpu.dimension_semantics<parallel>], iteration_bounds = array<i64: 3>, scalar_prefetch = 0 : i64, scratch_operands = 0 : i64, tpu.core_type = #tpu.core_type<tc>, window_params = [{transform_indices = @transform_0, window_bounds = array<i64: 8, 8, 128>}, {transform_indices = @transform_1, window_bounds = array<i64: 8, 128>}, {transform_indices = @transform_2, window_bounds = array<i64: 40, 128>}]} {
    %c0 = arith.constant 0 : index
    %c0_0 = arith.constant 0 : index
    %0 = vector.load %arg2[%c0, %c0_0] : memref<8x128xf32, #tpu.memory_space<vmem>>, vector<8x128xf32>
    %c0_1 = arith.constant 0 : index
    %c0_2 = arith.constant 0 : index
    %c0_3 = arith.constant 0 : index
    %1 = vector.load %arg1[%c0_1, %c0_2, %c0_3] : memref<8x8x128xf32, #tpu.memory_space<vmem>>, vector<1x8x128xf32>
    %2 = vector.shape_cast %1 : vector<1x8x128xf32> to vector<8x128xf32>
    %3 = arith.mulf %2, %0 : vector<8x128xf32>
    %c0_4 = arith.constant 0 : index
    %c0_5 = arith.constant 0 : index
    %c0_6 = arith.constant 0 : index
    %4 = vector.load %arg1[%c0_4, %c0_5, %c0_6] : memref<8x8x128xf32, #tpu.memory_space<vmem>>, vector<1x8x128xf32>
    %5 = vector.shape_cast %4 : vector<1x8x128xf32> to vector<8x128xf32>
    %6 = arith.mulf %3, %5 : vector<8x128xf32>
    %cst = arith.constant dense<0.000000e+00> : vector<128xf32>
    %7 = vector.multi_reduction <add>, %6, %cst [0] : vector<8x128xf32> to vector<128xf32>
    %8 = vector.shape_cast %7 : vector<128xf32> to vector<1x128xf32>
    %c1 = arith.constant 1 : index
    %c0_7 = arith.constant 0 : index
    %c0_8 = arith.constant 0 : index
    %9 = vector.load %arg1[%c1, %c0_7, %c0_8] : memref<8x8x128xf32, #tpu.memory_space<vmem>>, vector<1x8x128xf32>
    %10 = vector.shape_cast %9 : vector<1x8x128xf32> to vector<8x128xf32>
    %11 = arith.mulf %10, %0 : vector<8x128xf32>
    %c1_9 = arith.constant 1 : index
    %c0_10 = arith.constant 0 : index
    %c0_11 = arith.constant 0 : index
    %12 = vector.load %arg1[%c1_9, %c0_10, %c0_11] : memref<8x8x128xf32, #tpu.memory_space<vmem>>, vector<1x8x128xf32>
    %13 = vector.shape_cast %12 : vector<1x8x128xf32> to vector<8x128xf32>
    %14 = arith.mulf %11, %13 : vector<8x128xf32>
    %cst_12 = arith.constant dense<0.000000e+00> : vector<128xf32>
    %15 = vector.multi_reduction <add>, %14, %cst_12 [0] : vector<8x128xf32> to vector<128xf32>
    %16 = vector.shape_cast %15 : vector<128xf32> to vector<1x128xf32>
    %c2 = arith.constant 2 : index
    %c0_13 = arith.constant 0 : index
    %c0_14 = arith.constant 0 : index
    %17 = vector.load %arg1[%c2, %c0_13, %c0_14] : memref<8x8x128xf32, #tpu.memory_space<vmem>>, vector<1x8x128xf32>
    %18 = vector.shape_cast %17 : vector<1x8x128xf32> to vector<8x128xf32>
    %19 = arith.mulf %18, %0 : vector<8x128xf32>
    %c2_15 = arith.constant 2 : index
    %c0_16 = arith.constant 0 : index
    %c0_17 = arith.constant 0 : index
    %20 = vector.load %arg1[%c2_15, %c0_16, %c0_17] : memref<8x8x128xf32, #tpu.memory_space<vmem>>, vector<1x8x128xf32>
    %21 = vector.shape_cast %20 : vector<1x8x128xf32> to vector<8x128xf32>
    %22 = arith.mulf %19, %21 : vector<8x128xf32>
    %cst_18 = arith.constant dense<0.000000e+00> : vector<128xf32>
    %23 = vector.multi_reduction <add>, %22, %cst_18 [0] : vector<8x128xf32> to vector<128xf32>
    %24 = vector.shape_cast %23 : vector<128xf32> to vector<1x128xf32>
    %c3 = arith.constant 3 : index
    %c0_19 = arith.constant 0 : index
    %c0_20 = arith.constant 0 : index
    %25 = vector.load %arg1[%c3, %c0_19, %c0_20] : memref<8x8x128xf32, #tpu.memory_space<vmem>>, vector<1x8x128xf32>
    %26 = vector.shape_cast %25 : vector<1x8x128xf32> to vector<8x128xf32>
    %27 = arith.mulf %26, %0 : vector<8x128xf32>
    %c3_21 = arith.constant 3 : index
    %c0_22 = arith.constant 0 : index
    %c0_23 = arith.constant 0 : index
    %28 = vector.load %arg1[%c3_21, %c0_22, %c0_23] : memref<8x8x128xf32, #tpu.memory_space<vmem>>, vector<1x8x128xf32>
    %29 = vector.shape_cast %28 : vector<1x8x128xf32> to vector<8x128xf32>
    %30 = arith.mulf %27, %29 : vector<8x128xf32>
    %cst_24 = arith.constant dense<0.000000e+00> : vector<128xf32>
    %31 = vector.multi_reduction <add>, %30, %cst_24 [0] : vector<8x128xf32> to vector<128xf32>
    %32 = vector.shape_cast %31 : vector<128xf32> to vector<1x128xf32>
    %c4 = arith.constant 4 : index
    %c0_25 = arith.constant 0 : index
    %c0_26 = arith.constant 0 : index
    %33 = vector.load %arg1[%c4, %c0_25, %c0_26] : memref<8x8x128xf32, #tpu.memory_space<vmem>>, vector<1x8x128xf32>
    %34 = vector.shape_cast %33 : vector<1x8x128xf32> to vector<8x128xf32>
    %35 = arith.mulf %34, %0 : vector<8x128xf32>
    %c4_27 = arith.constant 4 : index
    %c0_28 = arith.constant 0 : index
    %c0_29 = arith.constant 0 : index
    %36 = vector.load %arg1[%c4_27, %c0_28, %c0_29] : memref<8x8x128xf32, #tpu.memory_space<vmem>>, vector<1x8x128xf32>
    %37 = vector.shape_cast %36 : vector<1x8x128xf32> to vector<8x128xf32>
    %38 = arith.mulf %35, %37 : vector<8x128xf32>
    %cst_30 = arith.constant dense<0.000000e+00> : vector<128xf32>
    %39 = vector.multi_reduction <add>, %38, %cst_30 [0] : vector<8x128xf32> to vector<128xf32>
    %40 = vector.shape_cast %39 : vector<128xf32> to vector<1x128xf32>
    %c5 = arith.constant 5 : index
    %c0_31 = arith.constant 0 : index
    %c0_32 = arith.constant 0 : index
    %41 = vector.load %arg1[%c5, %c0_31, %c0_32] : memref<8x8x128xf32, #tpu.memory_space<vmem>>, vector<1x8x128xf32>
    %42 = vector.shape_cast %41 : vector<1x8x128xf32> to vector<8x128xf32>
    %43 = arith.mulf %42, %0 : vector<8x128xf32>
    %c5_33 = arith.constant 5 : index
    %c0_34 = arith.constant 0 : index
    %c0_35 = arith.constant 0 : index
    %44 = vector.load %arg1[%c5_33, %c0_34, %c0_35] : memref<8x8x128xf32, #tpu.memory_space<vmem>>, vector<1x8x128xf32>
    %45 = vector.shape_cast %44 : vector<1x8x128xf32> to vector<8x128xf32>
    %46 = arith.mulf %43, %45 : vector<8x128xf32>
    %cst_36 = arith.constant dense<0.000000e+00> : vector<128xf32>
    %47 = vector.multi_reduction <add>, %46, %cst_36 [0] : vector<8x128xf32> to vector<128xf32>
    %48 = vector.shape_cast %47 : vector<128xf32> to vector<1x128xf32>
    %c6 = arith.constant 6 : index
    %c0_37 = arith.constant 0 : index
    %c0_38 = arith.constant 0 : index
    %49 = vector.load %arg1[%c6, %c0_37, %c0_38] : memref<8x8x128xf32, #tpu.memory_space<vmem>>, vector<1x8x128xf32>
    %50 = vector.shape_cast %49 : vector<1x8x128xf32> to vector<8x128xf32>
    %51 = arith.mulf %50, %0 : vector<8x128xf32>
    %c6_39 = arith.constant 6 : index
    %c0_40 = arith.constant 0 : index
    %c0_41 = arith.constant 0 : index
    %52 = vector.load %arg1[%c6_39, %c0_40, %c0_41] : memref<8x8x128xf32, #tpu.memory_space<vmem>>, vector<1x8x128xf32>
    %53 = vector.shape_cast %52 : vector<1x8x128xf32> to vector<8x128xf32>
    %54 = arith.mulf %51, %53 : vector<8x128xf32>
    %cst_42 = arith.constant dense<0.000000e+00> : vector<128xf32>
    %55 = vector.multi_reduction <add>, %54, %cst_42 [0] : vector<8x128xf32> to vector<128xf32>
    %56 = vector.shape_cast %55 : vector<128xf32> to vector<1x128xf32>
    %c7 = arith.constant 7 : index
    %c0_43 = arith.constant 0 : index
    %c0_44 = arith.constant 0 : index
    %57 = vector.load %arg1[%c7, %c0_43, %c0_44] : memref<8x8x128xf32, #tpu.memory_space<vmem>>, vector<1x8x128xf32>
    %58 = vector.shape_cast %57 : vector<1x8x128xf32> to vector<8x128xf32>
    %59 = arith.mulf %58, %0 : vector<8x128xf32>
    %c7_45 = arith.constant 7 : index
    %c0_46 = arith.constant 0 : index
    %c0_47 = arith.constant 0 : index
    %60 = vector.load %arg1[%c7_45, %c0_46, %c0_47] : memref<8x8x128xf32, #tpu.memory_space<vmem>>, vector<1x8x128xf32>
    %61 = vector.shape_cast %60 : vector<1x8x128xf32> to vector<8x128xf32>
    %62 = arith.mulf %59, %61 : vector<8x128xf32>
    %cst_48 = arith.constant dense<0.000000e+00> : vector<128xf32>
    %63 = vector.multi_reduction <add>, %62, %cst_48 [0] : vector<8x128xf32> to vector<128xf32>
    %64 = vector.shape_cast %63 : vector<128xf32> to vector<1x128xf32>
    %65 = tpu.concatenate %8, %16, %24, %32, %40, %48, %56, %64 in 0 : vector<1x128xf32>, vector<1x128xf32>, vector<1x128xf32>, vector<1x128xf32>, vector<1x128xf32>, vector<1x128xf32>, vector<1x128xf32>, vector<1x128xf32> -> vector<8x128xf32>
    %c0_49 = arith.constant 0 : index
    %c0_50 = arith.constant 0 : index
    %66 = vector.load %arg3[%c0_49, %c0_50] : memref<40x128xf32, #tpu.memory_space<vmem>>, vector<8x128xf32>
    tpu.vector_store %arg3[%c0_49, %c0_50], %65 {strides = array<i32>} : memref<40x128xf32, #tpu.memory_space<vmem>>, vector<8x128xf32>,
    %c1_51 = arith.constant 1 : index
    %c0_52 = arith.constant 0 : index
    %c0_53 = arith.constant 0 : index
    %67 = vector.load %arg1[%c1_51, %c0_52, %c0_53] : memref<8x8x128xf32, #tpu.memory_space<vmem>>, vector<1x8x128xf32>
    %68 = vector.shape_cast %67 : vector<1x8x128xf32> to vector<8x128xf32>
    %69 = arith.mulf %68, %0 : vector<8x128xf32>
    %c0_54 = arith.constant 0 : index
    %c0_55 = arith.constant 0 : index
    %c0_56 = arith.constant 0 : index
    %70 = vector.load %arg1[%c0_54, %c0_55, %c0_56] : memref<8x8x128xf32, #tpu.memory_space<vmem>>, vector<1x8x128xf32>
    %71 = vector.shape_cast %70 : vector<1x8x128xf32> to vector<8x128xf32>
    %72 = arith.mulf %69, %71 : vector<8x128xf32>
    %cst_57 = arith.constant dense<0.000000e+00> : vector<128xf32>
    %73 = vector.multi_reduction <add>, %72, %cst_57 [0] : vector<8x128xf32> to vector<128xf32>
    %74 = vector.shape_cast %73 : vector<128xf32> to vector<1x128xf32>
    %c2_58 = arith.constant 2 : index
    %c0_59 = arith.constant 0 : index
    %c0_60 = arith.constant 0 : index
    %75 = vector.load %arg1[%c2_58, %c0_59, %c0_60] : memref<8x8x128xf32, #tpu.memory_space<vmem>>, vector<1x8x128xf32>
    %76 = vector.shape_cast %75 : vector<1x8x128xf32> to vector<8x128xf32>
    %77 = arith.mulf %76, %0 : vector<8x128xf32>
    %c0_61 = arith.constant 0 : index
    %c0_62 = arith.constant 0 : index
    %c0_63 = arith.constant 0 : index
    %78 = vector.load %arg1[%c0_61, %c0_62, %c0_63] : memref<8x8x128xf32, #tpu.memory_space<vmem>>, vector<1x8x128xf32>
    %79 = vector.shape_cast %78 : vector<1x8x128xf32> to vector<8x128xf32>
    %80 = arith.mulf %77, %79 : vector<8x128xf32>
    %cst_64 = arith.constant dense<0.000000e+00> : vector<128xf32>
    %81 = vector.multi_reduction <add>, %80, %cst_64 [0] : vector<8x128xf32> to vector<128xf32>
    %82 = vector.shape_cast %81 : vector<128xf32> to vector<1x128xf32>
    %c1_65 = arith.constant 1 : index
    %c0_66 = arith.constant 0 : index
    %c0_67 = arith.constant 0 : index
    %83 = vector.load %arg1[%c1_65, %c0_66, %c0_67] : memref<8x8x128xf32, #tpu.memory_space<vmem>>, vector<1x8x128xf32>
    %84 = vector.shape_cast %83 : vector<1x8x128xf32> to vector<8x128xf32>
    %85 = arith.mulf %77, %84 : vector<8x128xf32>
    %cst_68 = arith.constant dense<0.000000e+00> : vector<128xf32>
    %86 = vector.multi_reduction <add>, %85, %cst_68 [0] : vector<8x128xf32> to vector<128xf32>
    %87 = vector.shape_cast %86 : vector<128xf32> to vector<1x128xf32>
    %c3_69 = arith.constant 3 : index
    %c0_70 = arith.constant 0 : index
    %c0_71 = arith.constant 0 : index
    %88 = vector.load %arg1[%c3_69, %c0_70, %c0_71] : memref<8x8x128xf32, #tpu.memory_space<vmem>>, vector<1x8x128xf32>
    %89 = vector.shape_cast %88 : vector<1x8x128xf32> to vector<8x128xf32>
    %90 = arith.mulf %89, %0 : vector<8x128xf32>
    %c0_72 = arith.constant 0 : index
    %c0_73 = arith.constant 0 : index
    %c0_74 = arith.constant 0 : index
    %91 = vector.load %arg1[%c0_72, %c0_73, %c0_74] : memref<8x8x128xf32, #tpu.memory_space<vmem>>, vector<1x8x128xf32>
    %92 = vector.shape_cast %91 : vector<1x8x128xf32> to vector<8x128xf32>
    %93 = arith.mulf %90, %92 : vector<8x128xf32>
    %cst_75 = arith.constant dense<0.000000e+00> : vector<128xf32>
    %94 = vector.multi_reduction <add>, %93, %cst_75 [0] : vector<8x128xf32> to vector<128xf32>
    %95 = vector.shape_cast %94 : vector<128xf32> to vector<1x128xf32>
    %c1_76 = arith.constant 1 : index
    %c0_77 = arith.constant 0 : index
    %c0_78 = arith.constant 0 : index
    %96 = vector.load %arg1[%c1_76, %c0_77, %c0_78] : memref<8x8x128xf32, #tpu.memory_space<vmem>>, vector<1x8x128xf32>
    %97 = vector.shape_cast %96 : vector<1x8x128xf32> to vector<8x128xf32>
    %98 = arith.mulf %90, %97 : vector<8x128xf32>
    %cst_79 = arith.constant dense<0.000000e+00> : vector<128xf32>
    %99 = vector.multi_reduction <add>, %98, %cst_79 [0] : vector<8x128xf32> to vector<128xf32>
    %100 = vector.shape_cast %99 : vector<128xf32> to vector<1x128xf32>
    %c2_80 = arith.constant 2 : index
    %c0_81 = arith.constant 0 : index
    %c0_82 = arith.constant 0 : index
    %101 = vector.load %arg1[%c2_80, %c0_81, %c0_82] : memref<8x8x128xf32, #tpu.memory_space<vmem>>, vector<1x8x128xf32>
    %102 = vector.shape_cast %101 : vector<1x8x128xf32> to vector<8x128xf32>
    %103 = arith.mulf %90, %102 : vector<8x128xf32>
    %cst_83 = arith.constant dense<0.000000e+00> : vector<128xf32>
    %104 = vector.multi_reduction <add>, %103, %cst_83 [0] : vector<8x128xf32> to vector<128xf32>
    %105 = vector.shape_cast %104 : vector<128xf32> to vector<1x128xf32>
    %c4_84 = arith.constant 4 : index
    %c0_85 = arith.constant 0 : index
    %c0_86 = arith.constant 0 : index
    %106 = vector.load %arg1[%c4_84, %c0_85, %c0_86] : memref<8x8x128xf32, #tpu.memory_space<vmem>>, vector<1x8x128xf32>
    %107 = vector.shape_cast %106 : vector<1x8x128xf32> to vector<8x128xf32>
    %108 = arith.mulf %107, %0 : vector<8x128xf32>
    %c0_87 = arith.constant 0 : index
    %c0_88 = arith.constant 0 : index
    %c0_89 = arith.constant 0 : index
    %109 = vector.load %arg1[%c0_87, %c0_88, %c0_89] : memref<8x8x128xf32, #tpu.memory_space<vmem>>, vector<1x8x128xf32>
    %110 = vector.shape_cast %109 : vector<1x8x128xf32> to vector<8x128xf32>
    %111 = arith.mulf %108, %110 : vector<8x128xf32>
    %cst_90 = arith.constant dense<0.000000e+00> : vector<128xf32>
    %112 = vector.multi_reduction <add>, %111, %cst_90 [0] : vector<8x128xf32> to vector<128xf32>
    %113 = vector.shape_cast %112 : vector<128xf32> to vector<1x128xf32>
    %c1_91 = arith.constant 1 : index
    %c0_92 = arith.constant 0 : index
    %c0_93 = arith.constant 0 : index
    %114 = vector.load %arg1[%c1_91, %c0_92, %c0_93] : memref<8x8x128xf32, #tpu.memory_space<vmem>>, vector<1x8x128xf32>
    %115 = vector.shape_cast %114 : vector<1x8x128xf32> to vector<8x128xf32>
    %116 = arith.mulf %108, %115 : vector<8x128xf32>
    %cst_94 = arith.constant dense<0.000000e+00> : vector<128xf32>
    %117 = vector.multi_reduction <add>, %116, %cst_94 [0] : vector<8x128xf32> to vector<128xf32>
    %118 = vector.shape_cast %117 : vector<128xf32> to vector<1x128xf32>
    %119 = tpu.concatenate %74, %82, %87, %95, %100, %105, %113, %118 in 0 : vector<1x128xf32>, vector<1x128xf32>, vector<1x128xf32>, vector<1x128xf32>, vector<1x128xf32>, vector<1x128xf32>, vector<1x128xf32>, vector<1x128xf32> -> vector<8x128xf32>
    %cst_95 = arith.constant 1.41421354 : f32
    %120 = vector.broadcast %cst_95 : f32 to vector<8x128xf32>
    %121 = arith.mulf %119, %120 : vector<8x128xf32>
    %c8 = arith.constant 8 : index
    %c0_96 = arith.constant 0 : index
    %122 = vector.load %arg3[%c8, %c0_96] : memref<40x128xf32, #tpu.memory_space<vmem>>, vector<8x128xf32>
    tpu.vector_store %arg3[%c8, %c0_96], %121 {strides = array<i32>} : memref<40x128xf32, #tpu.memory_space<vmem>>, vector<8x128xf32>,
    %c4_97 = arith.constant 4 : index
    %c0_98 = arith.constant 0 : index
    %c0_99 = arith.constant 0 : index
    %123 = vector.load %arg1[%c4_97, %c0_98, %c0_99] : memref<8x8x128xf32, #tpu.memory_space<vmem>>, vector<1x8x128xf32>
    %124 = vector.shape_cast %123 : vector<1x8x128xf32> to vector<8x128xf32>
    %125 = arith.mulf %124, %0 : vector<8x128xf32>
    %c2_100 = arith.constant 2 : index
    %c0_101 = arith.constant 0 : index
    %c0_102 = arith.constant 0 : index
    %126 = vector.load %arg1[%c2_100, %c0_101, %c0_102] : memref<8x8x128xf32, #tpu.memory_space<vmem>>, vector<1x8x128xf32>
    %127 = vector.shape_cast %126 : vector<1x8x128xf32> to vector<8x128xf32>
    %128 = arith.mulf %125, %127 : vector<8x128xf32>
    %cst_103 = arith.constant dense<0.000000e+00> : vector<128xf32>
    %129 = vector.multi_reduction <add>, %128, %cst_103 [0] : vector<8x128xf32> to vector<128xf32>
    %130 = vector.shape_cast %129 : vector<128xf32> to vector<1x128xf32>
    %c3_104 = arith.constant 3 : index
    %c0_105 = arith.constant 0 : index
    %c0_106 = arith.constant 0 : index
    %131 = vector.load %arg1[%c3_104, %c0_105, %c0_106] : memref<8x8x128xf32, #tpu.memory_space<vmem>>, vector<1x8x128xf32>
    %132 = vector.shape_cast %131 : vector<1x8x128xf32> to vector<8x128xf32>
    %133 = arith.mulf %125, %132 : vector<8x128xf32>
    %cst_107 = arith.constant dense<0.000000e+00> : vector<128xf32>
    %134 = vector.multi_reduction <add>, %133, %cst_107 [0] : vector<8x128xf32> to vector<128xf32>
    %135 = vector.shape_cast %134 : vector<128xf32> to vector<1x128xf32>
    %c5_108 = arith.constant 5 : index
    %c0_109 = arith.constant 0 : index
    %c0_110 = arith.constant 0 : index
    %136 = vector.load %arg1[%c5_108, %c0_109, %c0_110] : memref<8x8x128xf32, #tpu.memory_space<vmem>>, vector<1x8x128xf32>
    %137 = vector.shape_cast %136 : vector<1x8x128xf32> to vector<8x128xf32>
    %138 = arith.mulf %137, %0 : vector<8x128xf32>
    %c0_111 = arith.constant 0 : index
    %c0_112 = arith.constant 0 : index
    %c0_113 = arith.constant 0 : index
    %139 = vector.load %arg1[%c0_111, %c0_112, %c0_113] : memref<8x8x128xf32, #tpu.memory_space<vmem>>, vector<1x8x128xf32>
    %140 = vector.shape_cast %139 : vector<1x8x128xf32> to vector<8x128xf32>
    %141 = arith.mulf %138, %140 : vector<8x128xf32>
    %cst_114 = arith.constant dense<0.000000e+00> : vector<128xf32>
    %142 = vector.multi_reduction <add>, %141, %cst_114 [0] : vector<8x128xf32> to vector<128xf32>
    %143 = vector.shape_cast %142 : vector<128xf32> to vector<1x128xf32>
    %c1_115 = arith.constant 1 : index
    %c0_116 = arith.constant 0 : index
    %c0_117 = arith.constant 0 : index
    %144 = vector.load %arg1[%c1_115, %c0_116, %c0_117] : memref<8x8x128xf32, #tpu.memory_space<vmem>>, vector<1x8x128xf32>
    %145 = vector.shape_cast %144 : vector<1x8x128xf32> to vector<8x128xf32>
    %146 = arith.mulf %138, %145 : vector<8x128xf32>
    %cst_118 = arith.constant dense<0.000000e+00> : vector<128xf32>
    %147 = vector.multi_reduction <add>, %146, %cst_118 [0] : vector<8x128xf32> to vector<128xf32>
    %148 = vector.shape_cast %147 : vector<128xf32> to vector<1x128xf32>
    %c2_119 = arith.constant 2 : index
    %c0_120 = arith.constant 0 : index
    %c0_121 = arith.constant 0 : index
    %149 = vector.load %arg1[%c2_119, %c0_120, %c0_121] : memref<8x8x128xf32, #tpu.memory_space<vmem>>, vector<1x8x128xf32>
    %150 = vector.shape_cast %149 : vector<1x8x128xf32> to vector<8x128xf32>
    %151 = arith.mulf %138, %150 : vector<8x128xf32>
    %cst_122 = arith.constant dense<0.000000e+00> : vector<128xf32>
    %152 = vector.multi_reduction <add>, %151, %cst_122 [0] : vector<8x128xf32> to vector<128xf32>
    %153 = vector.shape_cast %152 : vector<128xf32> to vector<1x128xf32>
    %c3_123 = arith.constant 3 : index
    %c0_124 = arith.constant 0 : index
    %c0_125 = arith.constant 0 : index
    %154 = vector.load %arg1[%c3_123, %c0_124, %c0_125] : memref<8x8x128xf32, #tpu.memory_space<vmem>>, vector<1x8x128xf32>
    %155 = vector.shape_cast %154 : vector<1x8x128xf32> to vector<8x128xf32>
    %156 = arith.mulf %138, %155 : vector<8x128xf32>
    %cst_126 = arith.constant dense<0.000000e+00> : vector<128xf32>
    %157 = vector.multi_reduction <add>, %156, %cst_126 [0] : vector<8x128xf32> to vector<128xf32>
    %158 = vector.shape_cast %157 : vector<128xf32> to vector<1x128xf32>
    %c4_127 = arith.constant 4 : index
    %c0_128 = arith.constant 0 : index
    %c0_129 = arith.constant 0 : index
    %159 = vector.load %arg1[%c4_127, %c0_128, %c0_129] : memref<8x8x128xf32, #tpu.memory_space<vmem>>, vector<1x8x128xf32>
    %160 = vector.shape_cast %159 : vector<1x8x128xf32> to vector<8x128xf32>
    %161 = arith.mulf %138, %160 : vector<8x128xf32>
    %cst_130 = arith.constant dense<0.000000e+00> : vector<128xf32>
    %162 = vector.multi_reduction <add>, %161, %cst_130 [0] : vector<8x128xf32> to vector<128xf32>
    %163 = vector.shape_cast %162 : vector<128xf32> to vector<1x128xf32>
    %c6_131 = arith.constant 6 : index
    %c0_132 = arith.constant 0 : index
    %c0_133 = arith.constant 0 : index
    %164 = vector.load %arg1[%c6_131, %c0_132, %c0_133] : memref<8x8x128xf32, #tpu.memory_space<vmem>>, vector<1x8x128xf32>
    %165 = vector.shape_cast %164 : vector<1x8x128xf32> to vector<8x128xf32>
    %166 = arith.mulf %165, %0 : vector<8x128xf32>
    %c0_134 = arith.constant 0 : index
    %c0_135 = arith.constant 0 : index
    %c0_136 = arith.constant 0 : index
    %167 = vector.load %arg1[%c0_134, %c0_135, %c0_136] : memref<8x8x128xf32, #tpu.memory_space<vmem>>, vector<1x8x128xf32>
    %168 = vector.shape_cast %167 : vector<1x8x128xf32> to vector<8x128xf32>
    %169 = arith.mulf %166, %168 : vector<8x128xf32>
    %cst_137 = arith.constant dense<0.000000e+00> : vector<128xf32>
    %170 = vector.multi_reduction <add>, %169, %cst_137 [0] : vector<8x128xf32> to vector<128xf32>
    %171 = vector.shape_cast %170 : vector<128xf32> to vector<1x128xf32>
    %172 = tpu.concatenate %130, %135, %143, %148, %153, %158, %163, %171 in 0 : vector<1x128xf32>, vector<1x128xf32>, vector<1x128xf32>, vector<1x128xf32>, vector<1x128xf32>, vector<1x128xf32>, vector<1x128xf32>, vector<1x128xf32> -> vector<8x128xf32>
    %cst_138 = arith.constant 1.41421354 : f32
    %173 = vector.broadcast %cst_138 : f32 to vector<8x128xf32>
    %174 = arith.mulf %172, %173 : vector<8x128xf32>
    %c16 = arith.constant 16 : index
    %c0_139 = arith.constant 0 : index
    %175 = vector.load %arg3[%c16, %c0_139] : memref<40x128xf32, #tpu.memory_space<vmem>>, vector<8x128xf32>
    tpu.vector_store %arg3[%c16, %c0_139], %174 {strides = array<i32>} : memref<40x128xf32, #tpu.memory_space<vmem>>, vector<8x128xf32>,
    %c6_140 = arith.constant 6 : index
    %c0_141 = arith.constant 0 : index
    %c0_142 = arith.constant 0 : index
    %176 = vector.load %arg1[%c6_140, %c0_141, %c0_142] : memref<8x8x128xf32, #tpu.memory_space<vmem>>, vector<1x8x128xf32>
    %177 = vector.shape_cast %176 : vector<1x8x128xf32> to vector<8x128xf32>
    %178 = arith.mulf %177, %0 : vector<8x128xf32>
    %c1_143 = arith.constant 1 : index
    %c0_144 = arith.constant 0 : index
    %c0_145 = arith.constant 0 : index
    %179 = vector.load %arg1[%c1_143, %c0_144, %c0_145] : memref<8x8x128xf32, #tpu.memory_space<vmem>>, vector<1x8x128xf32>
    %180 = vector.shape_cast %179 : vector<1x8x128xf32> to vector<8x128xf32>
    %181 = arith.mulf %178, %180 : vector<8x128xf32>
    %cst_146 = arith.constant dense<0.000000e+00> : vector<128xf32>
    %182 = vector.multi_reduction <add>, %181, %cst_146 [0] : vector<8x128xf32> to vector<128xf32>
    %183 = vector.shape_cast %182 : vector<128xf32> to vector<1x128xf32>
    %c2_147 = arith.constant 2 : index
    %c0_148 = arith.constant 0 : index
    %c0_149 = arith.constant 0 : index
    %184 = vector.load %arg1[%c2_147, %c0_148, %c0_149] : memref<8x8x128xf32, #tpu.memory_space<vmem>>, vector<1x8x128xf32>
    %185 = vector.shape_cast %184 : vector<1x8x128xf32> to vector<8x128xf32>
    %186 = arith.mulf %178, %185 : vector<8x128xf32>
    %cst_150 = arith.constant dense<0.000000e+00> : vector<128xf32>
    %187 = vector.multi_reduction <add>, %186, %cst_150 [0] : vector<8x128xf32> to vector<128xf32>
    %188 = vector.shape_cast %187 : vector<128xf32> to vector<1x128xf32>
    %c3_151 = arith.constant 3 : index
    %c0_152 = arith.constant 0 : index
    %c0_153 = arith.constant 0 : index
    %189 = vector.load %arg1[%c3_151, %c0_152, %c0_153] : memref<8x8x128xf32, #tpu.memory_space<vmem>>, vector<1x8x128xf32>
    %190 = vector.shape_cast %189 : vector<1x8x128xf32> to vector<8x128xf32>
    %191 = arith.mulf %178, %190 : vector<8x128xf32>
    %cst_154 = arith.constant dense<0.000000e+00> : vector<128xf32>
    %192 = vector.multi_reduction <add>, %191, %cst_154 [0] : vector<8x128xf32> to vector<128xf32>
    %193 = vector.shape_cast %192 : vector<128xf32> to vector<1x128xf32>
    %c4_155 = arith.constant 4 : index
    %c0_156 = arith.constant 0 : index
    %c0_157 = arith.constant 0 : index
    %194 = vector.load %arg1[%c4_155, %c0_156, %c0_157] : memref<8x8x128xf32, #tpu.memory_space<vmem>>, vector<1x8x128xf32>
    %195 = vector.shape_cast %194 : vector<1x8x128xf32> to vector<8x128xf32>
    %196 = arith.mulf %178, %195 : vector<8x128xf32>
    %cst_158 = arith.constant dense<0.000000e+00> : vector<128xf32>
    %197 = vector.multi_reduction <add>, %196, %cst_158 [0] : vector<8x128xf32> to vector<128xf32>
    %198 = vector.shape_cast %197 : vector<128xf32> to vector<1x128xf32>
    %c5_159 = arith.constant 5 : index
    %c0_160 = arith.constant 0 : index
    %c0_161 = arith.constant 0 : index
    %199 = vector.load %arg1[%c5_159, %c0_160, %c0_161] : memref<8x8x128xf32, #tpu.memory_space<vmem>>, vector<1x8x128xf32>
    %200 = vector.shape_cast %199 : vector<1x8x128xf32> to vector<8x128xf32>
    %201 = arith.mulf %178, %200 : vector<8x128xf32>
    %cst_162 = arith.constant dense<0.000000e+00> : vector<128xf32>
    %202 = vector.multi_reduction <add>, %201, %cst_162 [0] : vector<8x128xf32> to vector<128xf32>
    %203 = vector.shape_cast %202 : vector<128xf32> to vector<1x128xf32>
    %c7_163 = arith.constant 7 : index
    %c0_164 = arith.constant 0 : index
    %c0_165 = arith.constant 0 : index
    %204 = vector.load %arg1[%c7_163, %c0_164, %c0_165] : memref<8x8x128xf32, #tpu.memory_space<vmem>>, vector<1x8x128xf32>
    %205 = vector.shape_cast %204 : vector<1x8x128xf32> to vector<8x128xf32>
    %206 = arith.mulf %205, %0 : vector<8x128xf32>
    %c0_166 = arith.constant 0 : index
    %c0_167 = arith.constant 0 : index
    %c0_168 = arith.constant 0 : index
    %207 = vector.load %arg1[%c0_166, %c0_167, %c0_168] : memref<8x8x128xf32, #tpu.memory_space<vmem>>, vector<1x8x128xf32>
    %208 = vector.shape_cast %207 : vector<1x8x128xf32> to vector<8x128xf32>
    %209 = arith.mulf %206, %208 : vector<8x128xf32>
    %cst_169 = arith.constant dense<0.000000e+00> : vector<128xf32>
    %210 = vector.multi_reduction <add>, %209, %cst_169 [0] : vector<8x128xf32> to vector<128xf32>
    %211 = vector.shape_cast %210 : vector<128xf32> to vector<1x128xf32>
    %c1_170 = arith.constant 1 : index
    %c0_171 = arith.constant 0 : index
    %c0_172 = arith.constant 0 : index
    %212 = vector.load %arg1[%c1_170, %c0_171, %c0_172] : memref<8x8x128xf32, #tpu.memory_space<vmem>>, vector<1x8x128xf32>
    %213 = vector.shape_cast %212 : vector<1x8x128xf32> to vector<8x128xf32>
    %214 = arith.mulf %206, %213 : vector<8x128xf32>
    %cst_173 = arith.constant dense<0.000000e+00> : vector<128xf32>
    %215 = vector.multi_reduction <add>, %214, %cst_173 [0] : vector<8x128xf32> to vector<128xf32>
    %216 = vector.shape_cast %215 : vector<128xf32> to vector<1x128xf32>
    %c2_174 = arith.constant 2 : index
    %c0_175 = arith.constant 0 : index
    %c0_176 = arith.constant 0 : index
    %217 = vector.load %arg1[%c2_174, %c0_175, %c0_176] : memref<8x8x128xf32, #tpu.memory_space<vmem>>, vector<1x8x128xf32>
    %218 = vector.shape_cast %217 : vector<1x8x128xf32> to vector<8x128xf32>
    %219 = arith.mulf %206, %218 : vector<8x128xf32>
    %cst_177 = arith.constant dense<0.000000e+00> : vector<128xf32>
    %220 = vector.multi_reduction <add>, %219, %cst_177 [0] : vector<8x128xf32> to vector<128xf32>
    %221 = vector.shape_cast %220 : vector<128xf32> to vector<1x128xf32>
    %222 = tpu.concatenate %183, %188, %193, %198, %203, %211, %216, %221 in 0 : vector<1x128xf32>, vector<1x128xf32>, vector<1x128xf32>, vector<1x128xf32>, vector<1x128xf32>, vector<1x128xf32>, vector<1x128xf32>, vector<1x128xf32> -> vector<8x128xf32>
    %cst_178 = arith.constant 1.41421354 : f32
    %223 = vector.broadcast %cst_178 : f32 to vector<8x128xf32>
    %224 = arith.mulf %222, %223 : vector<8x128xf32>
    %c24 = arith.constant 24 : index
    %c0_179 = arith.constant 0 : index
    %225 = vector.load %arg3[%c24, %c0_179] : memref<40x128xf32, #tpu.memory_space<vmem>>, vector<8x128xf32>
    tpu.vector_store %arg3[%c24, %c0_179], %224 {strides = array<i32>} : memref<40x128xf32, #tpu.memory_space<vmem>>, vector<8x128xf32>,
    %c7_180 = arith.constant 7 : index
    %c0_181 = arith.constant 0 : index
    %c0_182 = arith.constant 0 : index
    %226 = vector.load %arg1[%c7_180, %c0_181, %c0_182] : memref<8x8x128xf32, #tpu.memory_space<vmem>>, vector<1x8x128xf32>
    %227 = vector.shape_cast %226 : vector<1x8x128xf32> to vector<8x128xf32>
    %228 = arith.mulf %227, %0 : vector<8x128xf32>
    %c3_183 = arith.constant 3 : index
    %c0_184 = arith.constant 0 : index
    %c0_185 = arith.constant 0 : index
    %229 = vector.load %arg1[%c3_183, %c0_184, %c0_185] : memref<8x8x128xf32, #tpu.memory_space<vmem>>, vector<1x8x128xf32>
    %230 = vector.shape_cast %229 : vector<1x8x128xf32> to vector<8x128xf32>
    %231 = arith.mulf %228, %230 : vector<8x128xf32>
    %cst_186 = arith.constant dense<0.000000e+00> : vector<128xf32>
    %232 = vector.multi_reduction <add>, %231, %cst_186 [0] : vector<8x128xf32> to vector<128xf32>
    %233 = vector.shape_cast %232 : vector<128xf32> to vector<1x128xf32>
    %c4_187 = arith.constant 4 : index
    %c0_188 = arith.constant 0 : index
    %c0_189 = arith.constant 0 : index
    %234 = vector.load %arg1[%c4_187, %c0_188, %c0_189] : memref<8x8x128xf32, #tpu.memory_space<vmem>>, vector<1x8x128xf32>
    %235 = vector.shape_cast %234 : vector<1x8x128xf32> to vector<8x128xf32>
    %236 = arith.mulf %228, %235 : vector<8x128xf32>
    %cst_190 = arith.constant dense<0.000000e+00> : vector<128xf32>
    %237 = vector.multi_reduction <add>, %236, %cst_190 [0] : vector<8x128xf32> to vector<128xf32>
    %238 = vector.shape_cast %237 : vector<128xf32> to vector<1x128xf32>
    %c5_191 = arith.constant 5 : index
    %c0_192 = arith.constant 0 : index
    %c0_193 = arith.constant 0 : index
    %239 = vector.load %arg1[%c5_191, %c0_192, %c0_193] : memref<8x8x128xf32, #tpu.memory_space<vmem>>, vector<1x8x128xf32>
    %240 = vector.shape_cast %239 : vector<1x8x128xf32> to vector<8x128xf32>
    %241 = arith.mulf %228, %240 : vector<8x128xf32>
    %cst_194 = arith.constant dense<0.000000e+00> : vector<128xf32>
    %242 = vector.multi_reduction <add>, %241, %cst_194 [0] : vector<8x128xf32> to vector<128xf32>
    %243 = vector.shape_cast %242 : vector<128xf32> to vector<1x128xf32>
    %c6_195 = arith.constant 6 : index
    %c0_196 = arith.constant 0 : index
    %c0_197 = arith.constant 0 : index
    %244 = vector.load %arg1[%c6_195, %c0_196, %c0_197] : memref<8x8x128xf32, #tpu.memory_space<vmem>>, vector<1x8x128xf32>
    %245 = vector.shape_cast %244 : vector<1x8x128xf32> to vector<8x128xf32>
    %246 = arith.mulf %228, %245 : vector<8x128xf32>
    %cst_198 = arith.constant dense<0.000000e+00> : vector<128xf32>
    %247 = vector.multi_reduction <add>, %246, %cst_198 [0] : vector<8x128xf32> to vector<128xf32>
    %248 = vector.shape_cast %247 : vector<128xf32> to vector<1x128xf32>
    %cst_199 = arith.constant 0.000000e+00 : f32
    %249 = vector.broadcast %cst_199 : f32 to vector<1x128xf32>
    %cst_200 = arith.constant 0.000000e+00 : f32
    %250 = vector.broadcast %cst_200 : f32 to vector<1x128xf32>
    %cst_201 = arith.constant 0.000000e+00 : f32
    %251 = vector.broadcast %cst_201 : f32 to vector<1x128xf32>
    %cst_202 = arith.constant 0.000000e+00 : f32
    %252 = vector.broadcast %cst_202 : f32 to vector<1x128xf32>
    %253 = tpu.concatenate %233, %238, %243, %248, %249, %250, %251, %252 in 0 : vector<1x128xf32>, vector<1x128xf32>, vector<1x128xf32>, vector<1x128xf32>, vector<1x128xf32>, vector<1x128xf32>, vector<1x128xf32>, vector<1x128xf32> -> vector<8x128xf32>
    %cst_203 = arith.constant 1.41421354 : f32
    %254 = vector.broadcast %cst_203 : f32 to vector<8x128xf32>
    %255 = arith.mulf %253, %254 : vector<8x128xf32>
    %c32 = arith.constant 32 : index
    %c0_204 = arith.constant 0 : index
    %256 = vector.load %arg3[%c32, %c0_204] : memref<40x128xf32, #tpu.memory_space<vmem>>, vector<8x128xf32>
    tpu.vector_store %arg3[%c32, %c0_204], %255 {strides = array<i32>} : memref<40x128xf32, #tpu.memory_space<vmem>>, vector<8x128xf32>,
    return
  }
  func.func @transform_0(%arg0: i32) -> (i32, i32, i32) {
    %c0_i32 = arith.constant 0 : i32
    %c0_i32_0 = arith.constant 0 : i32
    %c0_i32_1 = arith.constant 0 : i32
    return %c0_i32, %c0_i32_0, %arg0 : i32, i32, i32
  }
  func.func @transform_1(%arg0: i32) -> (i32, i32) {
    %c0_i32 = arith.constant 0 : i32
    %c0_i32_0 = arith.constant 0 : i32
    return %c0_i32, %arg0 : i32, i32
  }
  func.func @transform_2(%arg0: i32) -> (i32, i32) {
    %c0_i32 = arith.constant 0 : i32
    %c0_i32_0 = arith.constant 0 : i32
    return %c0_i32, %arg0 : i32, i32
  }
}

</mosaic_0001>

<bundles_post_ra>
// kernel: tpu_custom_call.1
= control target key start
LH: loop header
LB: loop body
LE: loop exit
PB: predicated region body
PF: predicated region fallthrough
CT: control target
= control target key end

     0   :  { %7 = vsyncpa [#allocation3], 0  ;;  %s1281_s0 = inlined_call_operand.hbm [shape: f32[8,8,384], index: 0, kind: input, shape index: {}]   ;;  %s1282_s1 = inlined_call_operand.hbm [shape: f32[8,384], index: 1, kind: input, shape index: {}]   ;;  %s1283_s2 = inlined_call_operand.hbm [shape: f32[40,384], index: 2, kind: output, shape index: {}]  }
   0x1   :  { %9 = vsyncpa [#allocation3 + $0x1], 0 }
   0x2   :  { %10 = vsyncpa [#allocation6], 0 }
   0x3   :  { %12 = vsyncpa [#allocation6 + $0x1], 0 }
   0x4   :  { %13 = vsyncpa [#allocation4], 0 }
   0x5   :  { %15 = vsyncpa [#allocation4 + $0x1], 0  ;;  %s925_s9 = smov 0   ;;  %s927_s10 = smov 0  }
   0x6   :  { %s929_s11 = smov 0   ;;  %s931_s12 = smov 0  }
   0x7 LB: > { %s946_s13 = sadd.s32 4294967295, %s899_s12   ;;  %s669_s14 = sadd.s32 4294967294, %s899_s12   ;;  %s899_s12 = sphi %s931_s12, %s1300_s12   ;;  %s895_s11 = sphi %s929_s11, %s1299_s11   ;;  %s891_s10 = sphi %s927_s10, %s1298_s10   ;;  %s887_s9 = sphi %s925_s9, %s1297_s9  }
   0x8   : > { %s950_s15 = sadd.s32 1, %s899_s12   ;;  %s28_s16 = sadd.s32 1, %s895_s11 }
   0x9   : > { %s25_s17 = ssub.s32 %s899_s12, %s950_s15  ;;  %p35_p0 = scmp.ne.s32.totalorder %s895_s11, %s891_s10 }
   0xa   : > { %p26_p1 = scmp.eq.s32.totalorder %s25_s17, 0  ;;  %p36_p2 = scmp.eq.s32.totalorder %s899_s12, 0 }
   0xb   : > { %p41_p3 = scmp.ne.s32.totalorder %s891_s10, %s887_s9  ;;  %p42_p4 = scmp.eq.s32.totalorder %s946_s13, 0 }
   0xc   : > { %s962_s18 = scalar_select %p26_p1, %s895_s11, %s28_s16  }
   0xd   : > { %p964_p5 = por %p36_p2, %p35_p0  ;;  %p968_p6 = por %p42_p4, %p41_p3 }
   0xe   : > { %p91_p7 = scmp.eq.s32.totalorder %s946_s13, 2  ;;  %p97_p8 = scmp.eq.s32.totalorder %s669_s14, 2 }
   0xf   : > { %s1287_s20 = scalar_select %p968_p6, 1, 0 }
  0x10   : > { %p729_p9 = scmp.lt.s32.totalorder %s899_s12, 3  ;;  %p974_p10 = por %p91_p7, %p35_p0 }
  0x11   : > { %p978_p11 = por %p97_p8, %p41_p3  ;;  %s983_s23 = sand.u32 1, %s895_s11  }
  0x12   : > { %s1288_s21 = scalar_select %p974_p10, 1, 0 }
  0x13   : > { %s1289_s22 = scalar_select %p978_p11, 1, 0 }
  0x14   : > { %s673_s24 = sshll.u32 %s899_s12, 7  ;;  %s672_s25 = sshll.u32 %s983_s23, 6 }
  0x15   : > { %s992_s28 = scalar_lea.hbm %s1281_s0, %s673_s24  ;;  %s121_s29 = scalar_lea.vmem [#allocation2], %s672_s25 }
  0x16   : > { %s127_s30 = sshll.u32 %s121_s29, 4  ;;  %p996_p12 = pnand %p729_p9, %p964_p5  ;;  %s1000_s30 = int_to_ptr.vmem [resolvable:$true] %s127_s30 }
  0x17   : > { %s118_s4 = scalar_lea.sflag [#allocation3], %s983_s23  ;;  %s769_s5 = scalar_lea.hbm %s992_s28, 1024 }
  0x18   : > { %p770_p0 = scmp.ne.s32.totalorder %s992_s28, %s769_s5  ;;  %p771_p1 = pneg %p996_p12 }
  0x19   : > { %s774_s8 = scalar_lea.hbm %s1281_s0, 3072  ;;  %p775_p4 = scmp.lt.u32.totalorder %s992_s28, %s1281_s0 }
  0x1a   : > { %p772_p2 = pnand %p771_p1, %p770_p0  ;;  %p776_p5 = scmp.lt.u32.totalorder %s774_s8, %s769_s5 }
  0x1b   : > { %p778_p8 = scmp.lt.u32.totalorder %s769_s5, %s992_s28 }
  0x1c   : > { %p773_p3 = pneg %p772_p2  ;;  %p777_p7 = por %p776_p5, %p775_p4 }
  0x1e   : > { %p779_p9 = por %p778_p8, %p777_p7 }
  0x20   : > { %p780_p13 = pnand %p779_p9, %p773_p3 }
  0x22   : > { %783 = shalt.err (!%p780_p13)
}
  0x23   : > { %s784_s17 = scalar_lea.vmem %s1000_s30, 1024  ;;  %s901_s19 = smov [#allocation2]  }
  0x24   : > { %p785_p0 = scmp.ne.s32.totalorder %s1000_s30, %s784_s17  ;;  %s789_s25 = sshll.u32 %s901_s19, 4  ;;  %s790_s25 = int_to_ptr.vmem [resolvable:$false] %s789_s25 }
  0x25   : > { %s791_s26 = scalar_lea.vmem %s790_s25, 2048  ;;  %p792_p10 = scmp.lt.s32.totalorder %s1000_s30, %s790_s25 }
  0x26   : > { %p787_p2 = pnand %p785_p0, %p771_p1  ;;  %p793_p4 = scmp.lt.s32.totalorder %s791_s26, %s784_s17 }
  0x28   : > { %p788_p11 = pneg %p787_p2  ;;  %p794_p5 = por %p793_p4, %p792_p10 }
  0x2a   : > { %p795_p7 = pnand %p794_p5, %p788_p11 }
  0x2c   : > { %798 = shalt.err (!%p795_p7)
}
  0x2d   : > { %s902_s27 = smov 384   ;;  %s903_s29 = smov 128  }
  0x2e   : > { %s904_s5 = smov 8   ;;  %p153_p13 = scmp.lt.s32.totalorder %s899_s12, 4 }
  0x2f   : > { %721 = dma.hbm_to_vmem [thread:$0]  (!%p996_p12), %s992_s28, 1024, %s1000_s30, %s118_s4, %s902_s27, %s903_s29, %s904_s5  }
  0x30   : > { %s674_s6 = sshll.u32 %s983_s23, 3  ;;  %s1038_s14 = scalar_lea.hbm %s1282_s1, %s673_s24 }
  0x31   : > { %p1291_p10 = scmp.ge.s32.totalorder %s899_s12, 1  ;;  %s141_s17 = scalar_lea.vmem [#allocation5], %s674_s6 }
  0x32   : > { %s148_s19 = sshll.u32 %s141_s17, 4  ;;  %s138_s28 = scalar_lea.sflag [#allocation6], %s983_s23  ;;  %s149_s19 = int_to_ptr.vmem [resolvable:$true] %s148_s19 }
  0x33   : > { %p1042_p11 = pnand %p1291_p10, %p153_p13  ;;  %s799_s30 = scalar_lea.hbm %s1038_s14, 128 }
  0x34   : > { %p800_p3 = scmp.ne.s32.totalorder %s1038_s14, %s799_s30  ;;  %s804_s25 = scalar_lea.hbm %s1282_s1, 384 }
  0x35   : > { %s1292_s16 = scalar_select %p1042_p11, 1, 0 }
  0x36   : > { %p802_p8 = pnand %p800_p3, %p771_p1  ;;  %p805_p0 = scmp.lt.u32.totalorder %s1038_s14, %s1282_s1 }
  0x37   : > { %p806_p2 = scmp.lt.u32.totalorder %s804_s25, %s799_s30  ;;  %p808_p5 = scmp.lt.u32.totalorder %s799_s30, %s1038_s14 }
  0x38   : > { %p803_p9 = pneg %p802_p8 }
  0x39   : > { %p807_p4 = por %p806_p2, %p805_p0 }
  0x3b   : > { %p809_p7 = por %p808_p5, %p807_p4 }
  0x3d   : > { %p810_p13 = pnand %p809_p7, %p803_p9 }
  0x3f   : > { %813 = shalt.err (!%p810_p13)
}
  0x40   : > { %s814_s23 = scalar_lea.vmem %s149_s19, 128  ;;  %s905_s29 = smov [#allocation5]  }
  0x41   : > { %p815_p10 = scmp.ne.s32.totalorder %s149_s19, %s814_s23  ;;  %s819_s5 = sshll.u32 %s905_s29, 4  ;;  %s820_s5 = int_to_ptr.vmem [resolvable:$false] %s819_s5 }
  0x42   : > { %s821_s6 = scalar_lea.vmem %s820_s5, 256  ;;  %p822_p6 = scmp.lt.s32.totalorder %s149_s19, %s820_s5 }
  0x43   : > { %p817_p3 = pnand %p815_p10, %p771_p1  ;;  %p823_p11 = scmp.lt.s32.totalorder %s821_s6, %s814_s23 }
  0x45   : > { %p818_p8 = pneg %p817_p3  ;;  %p824_p0 = por %p823_p11, %p822_p6 }
  0x47   : > { %p825_p2 = pnand %p824_p0, %p818_p8 }
  0x49   : > { %828 = shalt.err (!%p825_p2)
}
  0x4a   : > { %724 = dma.hbm_to_vmem [thread:$0]  (!%p996_p12), %s1038_s14, 128, %s149_s19, %s138_s28  }
  0x4b   : > { %p1293_p9 = scmp.ne.s32.totalorder %s1292_s16, 0 }
  0x4c   : > { %s1069_s7 = sand.u32 (!%p1293_p9), 1, %s891_s10   ;;  %p1294_p1 = scmp.ne.s32.totalorder (!%p1293_p9), %s1287_s20, 0 }
  0x4d   : > { %157 = sbr.rel (%p1293_p9) target bundleno = 191 (0xbf), region = 28  ;;  %s677_s8 = sshll.u32 (!%p1293_p9), %s1069_s7, 6 }
  0x4e   : > { %s160_s17 = scalar_lea.sflag (!%p1293_p9), [#allocation3], %s1069_s7  ;;  %s163_s30 = scalar_lea.vmem (!%p1293_p9), [#allocation2], %s677_s8 }
  0x54   : > { %874 = dma.done.wait (%p1294_p1), %s160_s17, 1024  }
  0x55   : > { %876 = vsyncadd (%p1294_p1), %s160_s17, 4294966272  ;;  %s678_s3 = sshll.u32 %s1069_s7, 3  ;;  %s169_s14 = scalar_lea.sflag [#allocation6], %s1069_s7 }
  0x56   : > { %s172_s16 = scalar_lea.vmem [#allocation5], %s678_s3 }
  0x57   : > { %878 = dma.done.wait (%p1294_p1), %s169_s14, 128  }
  0x58   : > { %880 = vsyncadd (%p1294_p1), %s169_s14, 4294967168  ;;  %v198_v0 = vld [vmem:[%s172_s16] sm:$0xff]  ;;  %v1091_v5 = vld [vmem:[%s163_s30 + $0x10] sm:$0xff]  ;;  %vm278_vm0 = vcmask 1040384   ;;  %vm280_vm1 = vcmask 1041408   ;;  %vm282_vm2 = vcmask 1042432  }
  0x59   : > { %v1083_v1 = vld [vmem:[%s163_s30] sm:$0xff]  ;;  %v1085_v2 = vld [vmem:[%s163_s30 + $0x8] sm:$0xff]  ;;  %v1093_v6 = vld [vmem:[%s163_s30 + $0x18] sm:$0xff]  ;;  %v1098_v8 = vmul.f32 %v1091_v5, %v198_v0  ;;  %vm284_vm3 = vcmask 1043456   ;;  %vm286_vm4 = vcmask 1044480   ;;  %vm288_vm5 = vcmask 1045504  }
  0x5a   : > { %v200_v3 = vmul.f32 %v1083_v1, %v198_v0  ;;  %v1089_v4 = vmul.f32 %v1085_v2, %v198_v0  ;;  %v1095_v7 = vld [vmem:[%s163_s30 + $0x20] sm:$0xff]  ;;  %v1101_v9 = vmul.f32 %v1093_v6, %v198_v0  ;;  %v1106_v11 = vld [vmem:[%s163_s30 + $0x28] sm:$0xff]  ;;  %v1108_v12 = vld [vmem:[%s163_s30 + $0x30] sm:$0xff]  ;;  %vm290_vm6 = vcmask 1046528   ;;  %s711_s20 = smul.u32 40, %s1069_s7  ;;  %s708_s28 = sshll.u32 %s946_s13, 7 }
  0x5b   : > { %v1104_v10 = vmul.f32 %v1095_v7, %v198_v0  ;;  %v685_v13 = vld [vmem:[%s163_s30 + $0x38] sm:$0xff]  ;;  %v1114_v16 = vmul.f32 %v1106_v11, %v198_v0  ;;  %v1117_v17 = vmul.f32 %v1108_v12, %v198_v0  ;;  %v221_v18 = vmul.f32 %v1091_v5, %v1098_v8  ;;  %s1234_s26 = scalar_lea.hbm %s1283_s2, %s708_s28  ;;  %s561_s13 = scalar_lea.sflag [#allocation4], %s1069_s7 }
  0x5c   : > { %v201_v14 = vmul.f32 %v200_v3, %v1083_v1  ;;  %v211_v15 = vmul.f32 %v1085_v2, %v1089_v4  ;;  %v231_v19 = vmul.f32 %v1093_v6, %v1101_v9  ;;  %v1125_v21 = vmul.f32 %v685_v13, %v198_v0  ;;  %s1152_s19 = scalar_lea.vmem [#allocation7], %s711_s20  ;;  %p1295_p12 = scmp.ne.s32.totalorder %s1288_s21, 0 }
  0x5d   : > { %v241_v20 = vmul.f32 %v1095_v7, %v1104_v10  ;;  %v251_v24 = vmul.f32 %v1106_v11, %v1114_v16  ;;  %v261_v25 = vmul.f32 %v1108_v12, %v1117_v17  ;;  %v222_v26 = vrot.slane %v221_v18, 4  ;;  %s573_s24 = sshll.u32 %s1152_s19, 4  ;;  %s906_s23 = smov [#allocation7]   ;;  %s1236_s24 = int_to_ptr.vmem [resolvable:$true] %s573_s24 }
  0x5e   : > { %v202_v22 = vrot.slane %v201_v14, 4  ;;  %v212_v23 = vrot.slane %v211_v15, 4  ;;  %v232_v27 = vrot.slane %v231_v19, 4  ;;  %v271_v29 = vmul.f32 %v685_v13, %v1125_v21  ;;  %s829_s27 = scalar_lea.vmem %s1236_s24, 640  ;;  %s833_s29 = sshll.u32 %s906_s23, 4  ;;  %s834_s29 = int_to_ptr.vmem [resolvable:$false] %s833_s29 }
  0x5f   : > { %v242_v28 = vrot.slane %v241_v20, 4  ;;  %v252_v32 = vrot.slane %v251_v24, 4  ;;  %v262_v33 = vrot.slane %v261_v25, 4  ;;  %v223_v34 = vadd.f32 %v222_v26, %v221_v18  ;;  %p830_p6 = scmp.ne.s32.totalorder %s1236_s24, %s829_s27  ;;  %s835_s5 = scalar_lea.vmem %s834_s29, 1280 }
  0x60   : > { %v203_v30 = vadd.f32 %v202_v22, %v201_v14  ;;  %v213_v31 = vadd.f32 %v212_v23, %v211_v15  ;;  %v233_v35 = vadd.f32 %v232_v27, %v231_v19  ;;  %v272_v37 = vrot.slane %v271_v29, 4  ;;  %p836_p5 = scmp.lt.s32.totalorder %s1236_s24, %s834_s29  ;;  %p837_p7 = scmp.lt.s32.totalorder %s835_s5, %s829_s27 }
  0x61   : > { %v243_v36 = vadd.f32 %v242_v28, %v241_v20  ;;  %v253_v40 = vadd.f32 %v252_v32, %v251_v24  ;;  %v263_v41 = vadd.f32 %v262_v33, %v261_v25  ;;  %v224_v42 = vrot.slane %v223_v34, 2  ;;  %p831_p11 = pnand %p830_p6, %p1295_p12 }
  0x62   : > { %v204_v38 = vrot.slane %v203_v30, 2  ;;  %v214_v39 = vrot.slane %v213_v31, 2  ;;  %v234_v43 = vrot.slane %v233_v35, 2  ;;  %v273_v45 = vadd.f32 %v272_v37, %v271_v29  ;;  %p838_p13 = por %p837_p7, %p836_p5 }
  0x63   : > { %v244_v44 = vrot.slane %v243_v36, 2  ;;  %v254_v48 = vrot.slane %v253_v40, 2  ;;  %v264_v49 = vrot.slane %v263_v41, 2  ;;  %v225_v50 = vadd.f32 %v224_v42, %v223_v34  ;;  %p832_p4 = pneg %p831_p11 }
  0x64   : > { %v205_v46 = vadd.f32 %v204_v38, %v203_v30  ;;  %v215_v47 = vadd.f32 %v214_v39, %v213_v31  ;;  %v235_v51 = vadd.f32 %v234_v43, %v233_v35  ;;  %v274_v53 = vrot.slane %v273_v45, 2 }
  0x65   : > { %v245_v52 = vadd.f32 %v244_v44, %v243_v36  ;;  %v255_v56 = vadd.f32 %v254_v48, %v253_v40  ;;  %v265_v57 = vadd.f32 %v264_v49, %v263_v41  ;;  %v226_v58 = vrot.slane %v225_v50, 1  ;;  %p839_p10 = pnand %p838_p13, %p832_p4 }
  0x66   : > { %v206_v54 = vrot.slane %v205_v46, 1  ;;  %v216_v55 = vrot.slane %v215_v47, 1  ;;  %v236_v59 = vrot.slane %v235_v51, 1  ;;  %v275_v61 = vadd.f32 %v274_v53, %v273_v45 }
  0x67   : > { %v246_v60 = vrot.slane %v245_v52, 1  ;;  %v256_v0 = vrot.slane %v255_v56, 1  ;;  %v266_v3 = vrot.slane %v265_v57, 1  ;;  %v227_v13 = vadd.f32 %v226_v58, %v225_v50 }
  0x68   : > { %v207_v62 = vadd.f32 %v206_v54, %v205_v46  ;;  %v217_v63 = vadd.f32 %v216_v55, %v215_v47  ;;  %v237_v14 = vadd.f32 %v236_v59, %v235_v51  ;;  %v276_v18 = vrot.slane %v275_v61, 1 }
  0x69   : > { %v247_v15 = vadd.f32 %v246_v60, %v245_v52  ;;  %v257_v19 = vadd.f32 %v256_v0, %v255_v56  ;;  %v267_v20 = vadd.f32 %v266_v3, %v265_v57  ;;  %v296_v23 = vmul.f32 %v1089_v4, %v1083_v1 }
  0x6a   : > { %v279_v22 = vsel %vm278_vm0, %v207_v62, %v217_v63  ;;  %v277_v24 = vadd.f32 %v276_v18, %v275_v61  ;;  %v305_v26 = vmul.f32 %v1098_v8, %v1083_v1  ;;  %v312_v27 = vmul.f32 %v1085_v2, %v1098_v8 }
  0x6b   : > { %v281_v25 = vsel %vm280_vm1, %v279_v22, %v227_v13  ;;  %v297_v29 = vrot.slane %v296_v23, 4  ;;  %v321_v30 = vmul.f32 %v1101_v9, %v1083_v1  ;;  %v328_v31 = vmul.f32 %v1085_v2, %v1101_v9 }
  0x6c   : > { %v283_v28 = vsel %vm282_vm2, %v281_v25, %v237_v14  ;;  %v306_v32 = vrot.slane %v305_v26, 4  ;;  %v313_v33 = vrot.slane %v312_v27, 4  ;;  %v335_v34 = vmul.f32 %v1091_v5, %v1101_v9 }
  0x6d   : > { %v285_v4 = vsel %vm284_vm3, %v283_v28, %v247_v15  ;;  %v298_v36 = vadd.f32 %v297_v29, %v296_v23  ;;  %v322_v8 = vrot.slane %v321_v30, 4  ;;  %v329_v37 = vrot.slane %v328_v31, 4 }
  0x6e   : > { %v287_v35 = vsel %vm286_vm4, %v285_v4, %v257_v19  ;;  %v307_v39 = vadd.f32 %v306_v32, %v305_v26  ;;  %v314_v40 = vadd.f32 %v313_v33, %v312_v27  ;;  %v336_v41 = vrot.slane %v335_v34, 4 }
  0x6f   : > { %v289_v38 = vsel %vm288_vm5, %v287_v35, %v267_v20  ;;  %v299_v43 = vrot.slane %v298_v36, 2  ;;  %v323_v44 = vadd.f32 %v322_v8, %v321_v30  ;;  %v330_v45 = vadd.f32 %v329_v37, %v328_v31 }
  0x70   : > { %v291_v42 = vsel %vm290_vm6, %v289_v38, %v277_v24  ;;  %v308_v9 = vrot.slane %v307_v39, 2  ;;  %v315_v46 = vrot.slane %v314_v40, 2  ;;  %v337_v47 = vadd.f32 %v336_v41, %v335_v34 }
  0x71   : > { %292 = vst [vmem:[%s1152_s19] sm:$0xff] %v291_v42  ;;  %v344_v48 = vmul.f32 %v1104_v10, %v1083_v1  ;;  %v300_v49 = vadd.f32 %v299_v43, %v298_v36  ;;  %v324_v50 = vrot.slane %v323_v44, 2  ;;  %v331_v51 = vrot.slane %v330_v45, 2 }
  0x72   : > { %v351_v52 = vmul.f32 %v1085_v2, %v1104_v10  ;;  %v309_v53 = vadd.f32 %v308_v9, %v307_v39  ;;  %v316_v54 = vadd.f32 %v315_v46, %v314_v40  ;;  %v338_v55 = vrot.slane %v337_v47, 2 }
  0x73   : > { %v345_v56 = vrot.slane %v344_v48, 4  ;;  %v301_v57 = vrot.slane %v300_v49, 1  ;;  %v325_v58 = vadd.f32 %v324_v50, %v323_v44  ;;  %v332_v59 = vadd.f32 %v331_v51, %v330_v45 }
  0x74   : > { %v352_v60 = vrot.slane %v351_v52, 4  ;;  %v310_v61 = vrot.slane %v309_v53, 1  ;;  %v317_v62 = vrot.slane %v316_v54, 1  ;;  %v339_v63 = vadd.f32 %v338_v55, %v337_v47 }
  0x75   : > { %v346_v0 = vadd.f32 %v345_v56, %v344_v48  ;;  %v302_v3 = vadd.f32 %v301_v57, %v300_v49  ;;  %v326_v13 = vrot.slane %v325_v58, 1  ;;  %v333_v14 = vrot.slane %v332_v59, 1 }
  0x76   : > { %v353_v15 = vadd.f32 %v352_v60, %v351_v52  ;;  %v311_v18 = vadd.f32 %v310_v61, %v309_v53  ;;  %v318_v19 = vadd.f32 %v317_v62, %v316_v54  ;;  %v340_v20 = vrot.slane %v339_v63, 1 }
  0x77   : > { %v347_v22 = vrot.slane %v346_v0, 2  ;;  %v327_v23 = vadd.f32 %v326_v13, %v325_v58  ;;  %v334_v24 = vadd.f32 %v333_v14, %v332_v59  ;;  %v370_v26 = vmul.f32 %v1091_v5, %v1104_v10 }
  0x78   : > { %v354_v25 = vrot.slane %v353_v15, 2  ;;  %v341_v27 = vadd.f32 %v340_v20, %v339_v63  ;;  %v358_v29 = vsel %vm278_vm0, %v302_v3, %v311_v18  ;;  %v378_v30 = vmul.f32 %v1093_v6, %v1104_v10 }
  0x79   : > { %v348_v28 = vadd.f32 %v347_v22, %v346_v0  ;;  %v359_v4 = vsel %vm280_vm1, %v358_v29, %v318_v19  ;;  %v371_v32 = vrot.slane %v370_v26, 4  ;;  %v388_v33 = vmul.f32 %v1114_v16, %v1083_v1 }
  0x7a   : > { %v355_v31 = vadd.f32 %v354_v25, %v353_v15  ;;  %v360_v35 = vsel %vm282_vm2, %v359_v4, %v327_v23  ;;  %v379_v36 = vrot.slane %v378_v30, 4  ;;  %v396_v8 = vmul.f32 %v1085_v2, %v1114_v16 }
  0x7b   : > { %v349_v34 = vrot.slane %v348_v28, 1  ;;  %v361_v38 = vsel %vm284_vm3, %v360_v35, %v334_v24  ;;  %v372_v39 = vadd.f32 %v371_v32, %v370_v26  ;;  %v389_v40 = vrot.slane %v388_v33, 4 }
  0x7c   : > { %v356_v37 = vrot.slane %v355_v31, 1  ;;  %v362_v41 = vsel %vm286_vm4, %v361_v38, %v341_v27  ;;  %v380_v42 = vadd.f32 %v379_v36, %v378_v30  ;;  %v397_v43 = vrot.slane %v396_v8, 4 }
  0x7d   : > { %v350_v10 = vadd.f32 %v349_v34, %v348_v28  ;;  %v373_v45 = vrot.slane %v372_v39, 2  ;;  %v390_v9 = vadd.f32 %v389_v40, %v388_v33  ;;  %v403_v46 = vmul.f32 %v1091_v5, %v1114_v16 }
  0x7e   : > { %v357_v44 = vadd.f32 %v356_v37, %v355_v31  ;;  %v381_v48 = vrot.slane %v380_v42, 2  ;;  %v398_v49 = vadd.f32 %v397_v43, %v396_v8  ;;  %v410_v50 = vmul.f32 %v1093_v6, %v1114_v16 }
  0x7f   : > { %v363_v47 = vsel %vm288_vm5, %v362_v41, %v350_v10  ;;  %v374_v52 = vadd.f32 %v373_v45, %v372_v39  ;;  %v391_v53 = vrot.slane %v390_v9, 2  ;;  %v404_v54 = vrot.slane %v403_v46, 4 }
  0x80   : > { %v364_v51 = vsel %vm290_vm6, %v363_v47, %v357_v44  ;;  %v382_v56 = vadd.f32 %v381_v48, %v380_v42  ;;  %v399_v57 = vrot.slane %v398_v49, 2  ;;  %v411_v58 = vrot.slane %v410_v50, 4 }
  0x81   : > { %v365_v55 = vmul.f32 1.4142135, %v364_v51  ;;  %v375_v59 = vrot.slane %v374_v52, 1  ;;  %v392_v60 = vadd.f32 %v391_v53, %v390_v9  ;;  %v405_v61 = vadd.f32 %v404_v54, %v403_v46 }
  0x82   : > { %v417_v62 = vmul.f32 %v1095_v7, %v1114_v16  ;;  %v383_v63 = vrot.slane %v382_v56, 1  ;;  %v400_v0 = vadd.f32 %v399_v57, %v398_v49  ;;  %v412_v3 = vadd.f32 %v411_v58, %v410_v50 }
  0x83   : > { %366 = vst [vmem:[%s1152_s19 + $0x8] sm:$0xff] %v365_v55  ;;  %v426_v13 = vmul.f32 %v1117_v17, %v1083_v1  ;;  %v376_v14 = vadd.f32 %v375_v59, %v374_v52  ;;  %v393_v15 = vrot.slane %v392_v60, 1  ;;  %v406_v18 = vrot.slane %v405_v61, 2 }
  0x84   : > { %v418_v19 = vrot.slane %v417_v62, 4  ;;  %v384_v20 = vadd.f32 %v383_v63, %v382_v56  ;;  %v401_v22 = vrot.slane %v400_v0, 1  ;;  %v413_v23 = vrot.slane %v412_v3, 2 }
  0x85   : > { %v427_v24 = vrot.slane %v426_v13, 4  ;;  %v394_v25 = vadd.f32 %v393_v15, %v392_v60  ;;  %v407_v26 = vadd.f32 %v406_v18, %v405_v61  ;;  %v445_v16 = vmul.f32 %v1085_v2, %v1117_v17 }
  0x86   : > { %v419_v27 = vadd.f32 %v418_v19, %v417_v62  ;;  %v402_v28 = vadd.f32 %v401_v22, %v400_v0  ;;  %v414_v29 = vadd.f32 %v413_v23, %v412_v3  ;;  %v433_v31 = vsel %vm278_vm0, %v376_v14, %v384_v20 }
  0x87   : > { %v428_v30 = vadd.f32 %v427_v24, %v426_v13  ;;  %v408_v4 = vrot.slane %v407_v26, 1  ;;  %v434_v33 = vsel %vm280_vm1, %v433_v31, %v394_v25  ;;  %v446_v34 = vrot.slane %v445_v16, 4 }
  0x88   : > { %v420_v32 = vrot.slane %v419_v27, 2  ;;  %v415_v35 = vrot.slane %v414_v29, 1  ;;  %v435_v8 = vsel %vm282_vm2, %v434_v33, %v402_v28  ;;  %v453_v37 = vmul.f32 %v1091_v5, %v1117_v17 }
  0x89   : > { %v429_v36 = vrot.slane %v428_v30, 2  ;;  %v409_v38 = vadd.f32 %v408_v4, %v407_v26  ;;  %v447_v40 = vadd.f32 %v446_v34, %v445_v16  ;;  %v461_v10 = vmul.f32 %v1093_v6, %v1117_v17 }
  0x8a   : > { %v421_v39 = vadd.f32 %v420_v32, %v419_v27  ;;  %v416_v41 = vadd.f32 %v415_v35, %v414_v29  ;;  %v454_v43 = vrot.slane %v453_v37, 4  ;;  %v469_v44 = vmul.f32 %v1095_v7, %v1117_v17 }
  0x8b   : > { %v430_v42 = vadd.f32 %v429_v36, %v428_v30  ;;  %v436_v9 = vsel %vm284_vm3, %v435_v8, %v409_v38  ;;  %v448_v46 = vrot.slane %v447_v40, 2  ;;  %v462_v47 = vrot.slane %v461_v10, 4 }
  0x8c   : > { %v422_v45 = vrot.slane %v421_v39, 1  ;;  %v437_v49 = vsel %vm286_vm4, %v436_v9, %v416_v41  ;;  %v455_v50 = vadd.f32 %v454_v43, %v453_v37  ;;  %v470_v51 = vrot.slane %v469_v44, 4 }
  0x8d   : > { %v431_v48 = vrot.slane %v430_v42, 1  ;;  %v449_v53 = vadd.f32 %v448_v46, %v447_v40  ;;  %v463_v54 = vadd.f32 %v462_v47, %v461_v10  ;;  %v477_v55 = vmul.f32 %v1106_v11, %v1117_v17 }
  0x8e   : > { %v423_v52 = vadd.f32 %v422_v45, %v421_v39  ;;  %v456_v57 = vrot.slane %v455_v50, 2  ;;  %v471_v58 = vadd.f32 %v470_v51, %v469_v44  ;;  %v487_v59 = vmul.f32 %v1125_v21, %v1083_v1 }
  0x8f   : > { %v432_v56 = vadd.f32 %v431_v48, %v430_v42  ;;  %v450_v61 = vrot.slane %v449_v53, 1  ;;  %v464_v62 = vrot.slane %v463_v54, 2  ;;  %v478_v63 = vrot.slane %v477_v55, 4 }
  0x90   : > { %v438_v60 = vsel %vm288_vm5, %v437_v49, %v423_v52  ;;  %v457_v3 = vadd.f32 %v456_v57, %v455_v50  ;;  %v472_v13 = vrot.slane %v471_v58, 2  ;;  %v488_v14 = vrot.slane %v487_v59, 4 }
  0x91   : > { %v439_v0 = vsel %vm290_vm6, %v438_v60, %v432_v56  ;;  %v451_v18 = vadd.f32 %v450_v61, %v449_v53  ;;  %v465_v17 = vadd.f32 %v464_v62, %v463_v54  ;;  %v479_v19 = vadd.f32 %v478_v63, %v477_v55 }
  0x92   : > { %v440_v15 = vmul.f32 1.4142135, %v439_v0  ;;  %v458_v20 = vrot.slane %v457_v3, 1  ;;  %v473_v22 = vadd.f32 %v472_v13, %v471_v58  ;;  %v489_v23 = vadd.f32 %v488_v14, %v487_v59 }
  0x93   : > { %v494_v1 = vmul.f32 %v1085_v2, %v1125_v21  ;;  %v466_v24 = vrot.slane %v465_v17, 1  ;;  %v480_v25 = vrot.slane %v479_v19, 2  ;;  %v501_v26 = vmul.f32 %v1091_v5, %v1125_v21 }
  0x94   : > { %441 = vst [vmem:[%s1152_s19 + $0x10] sm:$0xff] %v440_v15  ;;  %v520_v27 = vmul.f32 %v1093_v6, %v1125_v21  ;;  %v459_v16 = vadd.f32 %v458_v20, %v457_v3  ;;  %v474_v28 = vrot.slane %v473_v22, 1  ;;  %v490_v29 = vrot.slane %v489_v23, 2 }
  0x95   : > { %v495_v30 = vrot.slane %v494_v1, 4  ;;  %v467_v31 = vadd.f32 %v466_v24, %v465_v17  ;;  %v481_v4 = vadd.f32 %v480_v25, %v479_v19  ;;  %v502_v32 = vrot.slane %v501_v26, 4 }
  0x96   : > { %v521_v33 = vrot.slane %v520_v27, 4  ;;  %v475_v34 = vadd.f32 %v474_v28, %v473_v22  ;;  %v491_v35 = vadd.f32 %v490_v29, %v489_v23  ;;  %v508_v36 = vsel %vm278_vm0, %v451_v18, %v459_v16 }
  0x97   : > { %v496_v2 = vadd.f32 %v495_v30, %v494_v1  ;;  %v482_v8 = vrot.slane %v481_v4, 1  ;;  %v503_v37 = vadd.f32 %v502_v32, %v501_v26  ;;  %v509_v5 = vsel %vm280_vm1, %v508_v36, %v467_v31 }
  0x98   : > { %v522_v38 = vadd.f32 %v521_v33, %v520_v27  ;;  %v492_v39 = vrot.slane %v491_v35, 1  ;;  %v510_v40 = vsel %vm282_vm2, %v509_v5, %v475_v34  ;;  %v528_v10 = vmul.f32 %v1095_v7, %v1125_v21 }
  0x99   : > { %v497_v6 = vrot.slane %v496_v2, 2  ;;  %v483_v41 = vadd.f32 %v482_v8, %v481_v4  ;;  %v504_v42 = vrot.slane %v503_v37, 2  ;;  %v536_v44 = vmul.f32 %v1106_v11, %v1125_v21 }
  0x9a   : > { %v523_v43 = vrot.slane %v522_v38, 2  ;;  %v493_v45 = vadd.f32 %v492_v39, %v491_v35  ;;  %v529_v46 = vrot.slane %v528_v10, 4  ;;  %v544_v47 = vmul.f32 %v1108_v12, %v1125_v21 }
  0x9b   : > { %v498_v9 = vadd.f32 %v497_v6, %v496_v2  ;;  %v505_v48 = vadd.f32 %v504_v42, %v503_v37  ;;  %v511_v49 = vsel %vm284_vm3, %v510_v40, %v483_v41  ;;  %v537_v51 = vrot.slane %v536_v44, 4 }
  0x9c   : > { %v524_v50 = vadd.f32 %v523_v43, %v522_v38  ;;  %v530_v53 = vadd.f32 %v529_v46, %v528_v10  ;;  %v545_v7 = vrot.slane %v544_v47, 4  ;;  %v512_v55 = vsel %vm286_vm4, %v511_v49, %v493_v45 }
  0x9d   : > { %v499_v52 = vrot.slane %v498_v9, 1  ;;  %v506_v54 = vrot.slane %v505_v48, 1  ;;  %v538_v56 = vadd.f32 %v537_v51, %v536_v44 }
  0x9e   : > { %v525_v11 = vrot.slane %v524_v50, 1  ;;  %v531_v58 = vrot.slane %v530_v53, 2  ;;  %v546_v59 = vadd.f32 %v545_v7, %v544_v47 }
  0x9f   : > { %v500_v57 = vadd.f32 %v499_v52, %v498_v9  ;;  %v507_v60 = vadd.f32 %v506_v54, %v505_v48  ;;  %v539_v61 = vrot.slane %v538_v56, 2 }
  0xa0   : > { %v532_v21 = vadd.f32 %v531_v58, %v530_v53  ;;  %v547_v62 = vrot.slane %v546_v59, 2  ;;  %v526_v13 = vadd.f32 %v525_v11, %v524_v50 }
  0xa1   : > { %v513_v12 = vsel %vm288_vm5, %v512_v55, %v500_v57  ;;  %v540_v0 = vadd.f32 %v539_v61, %v538_v56 }
  0xa2   : > { %v514_v63 = vsel %vm290_vm6, %v513_v12, %v507_v60  ;;  %v533_v14 = vrot.slane %v532_v21, 1  ;;  %v548_v15 = vadd.f32 %v547_v62, %v546_v59 }
  0xa3   : > { %v515_v3 = vmul.f32 1.4142135, %v514_v63  ;;  %v541_v18 = vrot.slane %v540_v0, 1 }
  0xa4   : > { %v534_v17 = vadd.f32 %v533_v14, %v532_v21  ;;  %v549_v19 = vrot.slane %v548_v15, 1 }
  0xa5   : > { %516 = vst [vmem:[%s1152_s19 + $0x18] sm:$0xff] %v515_v3  ;;  %v542_v20 = vadd.f32 %v541_v18, %v540_v0 }
  0xa6   : > { %v550_v22 = vadd.f32 %v549_v19, %v548_v15  ;;  %v551_v23 = vsel %vm278_vm0, %v526_v13, %v534_v17 }
  0xa7   : > { %v552_v1 = vsel %vm280_vm1, %v551_v23, %v542_v20 }
  0xa8   : > { %v553_v24 = vsel %vm282_vm2, %v552_v1, %v550_v22 }
  0xa9   : > { %v554_v25 = vsel %vm284_vm3, %v553_v24, 0.0 }
  0xaa   : > { %v555_v26 = vsel %vm286_vm4, %v554_v25, 0.0 }
  0xab   : > { %v556_v27 = vsel %vm288_vm5, %v555_v26, 0.0 }
  0xac   : > { %v557_v16 = vsel %vm290_vm6, %v556_v27, 0.0 }
  0xad   : > { %v558_v28 = vmul.f32 1.4142135, %v557_v16 }
  0xaf   : > { %559 = vst [vmem:[%s1152_s19 + $0x20] sm:$0xff] %v558_v28 }
  0xb0   : > { %842 = shalt.err (!%p839_p10)
}
  0xb1   : > { %s843_s6 = scalar_lea.hbm %s1234_s26, 640  ;;  %s847_s30 = scalar_lea.hbm %s1283_s2, 1920 }
  0xb2   : > { %p844_p3 = scmp.ne.s32.totalorder %s1234_s26, %s843_s6  ;;  %p848_p2 = scmp.lt.u32.totalorder %s1234_s26, %s1283_s2 }
  0xb3   : > { %p849_p9 = scmp.lt.u32.totalorder %s847_s30, %s843_s6  ;;  %p851_p6 = scmp.lt.u32.totalorder %s843_s6, %s1234_s26 }
  0xb4   : > { %p845_p8 = pnand %p844_p3, %p1295_p12 }
  0xb5   : > { %p850_p1 = por %p849_p9, %p848_p2 }
  0xb6   : > { %p846_p0 = pneg %p845_p8 }
  0xb7   : > { %p852_p11 = por %p851_p6, %p850_p1 }
  0xb9   : > { %p853_p4 = pnand %p852_p11, %p846_p0 }
  0xbb   : > { %856 = shalt.err (!%p853_p4)
}
  0xbc   : > { %s907_s16 = smov 128   ;;  %s908_s20 = smov 384  }
  0xbd   : > { %s909_s19 = smov 8  }
  0xbe   : > { %716 = dma.vmem_to_hbm [thread:$0]  (%p1295_p12), %s1236_s24, 640, %s1234_s26, %s561_s13, %s907_s16, %s908_s20, %s909_s19  }
  0xbf PF: > { %p730_p5 = scmp.ge.s32.totalorder %s899_s12, 2  ;;  %s588_s28 = sand.u32 1, %s887_s9  }
  0xc0   : > { %p1296_p7 = scmp.ne.s32.totalorder %s1289_s22, 0  ;;  %s589_s4 = scalar_lea.sflag [#allocation4], %s588_s28 }
  0xc2   : > { %p726_p13 = pnand %p730_p5, %p1296_p7 }
  0xc4   : > { %882 = dma.done.wait (!%p726_p13), %s589_s4, 640  }
  0xc5   : > { %884 = vsyncadd (!%p726_p13), %s589_s4, 4294966656  ;;  %p18_p10 = scmp.ge.s32.totalorder %s950_s15, 5   ;;  %s1297_s9 = smov %s891_s10 }
  0xc6   : > { %s1298_s10 = smov %s895_s11  ;;  %s1299_s11 = smov %s962_s18 }
  0xc7   : > { %s1300_s12 = smov %s950_s15  ;;  %20 = sbr.rel (!%p18_p10) target bundleno = 7 (0x7), region = 93 }
  0xce   :  { %594 = vsyncpa [#allocation3], 1 }
  0xcf   :  { %596 = vsyncpa [#allocation3 + $0x1], 1 }
  0xd0   :  { %597 = vsyncpa [#allocation6], 1 }
  0xd1   :  { %599 = vsyncpa [#allocation6 + $0x1], 1 }
  0xd2   :  { %600 = vsyncpa [#allocation4], 1 }
  0xd3   :  { %602 = vsyncpa [#allocation4 + $0x1], 1 }

</bundles_post_ra>
